<compile_context>
chip_gen: v5e
topology: v5e:2x2
jax: 0.10.0
libtpu: 0.0.40
codegen_flags: <defaults>
</compile_context>

<pallas_src>
import functools

import jax
import jax.numpy as jnp
from jax.experimental import pallas as pl
from jax.experimental.pallas import tpu as pltpu

_LANE = 128
_XW_RESIDENT_BUDGET = 8 * 1024 * 1024  # bytes of bf16 XW kept resident in VMEM


def _round_up(x, m):
    return ((x + m - 1) // m) * m


def _choose_tiles(n_pad):
    """Destination-node tile TM and source-node (contraction) tile TK."""
    tm = n_pad
    for cand in (512, 256, 128, 64):
        if n_pad % cand == 0 and n_pad // cand >= 2:   # >=2 tiles for megacore
            tm = cand
            break
    tk = _LANE
    for cand in (2048, 1024, 512, 256, 128):
        if n_pad % cand == 0:
            tk = cand
            break
    return tm, tk


def _rgcn_layer_kernel(a_ref, xw_ref, invdeg_ref, root_ref, o_ref, *,
                       apply_relu, xw_resident, n_pad, tk):
    """One RGCNConv layer, one (node-tile i, relation r, k-tile) grid step.

    grid = (num_node_tiles, R, num_k_tiles); axes 1 and 2 are reduction axes
    (the output block index depends only on axis 0, so o_ref is resident and
    accumulated across r and k).

      a_ref:      (1, TM, TK)                       int8  in-edge counts
      xw_ref:     resident (R*N, Fp) | stream (TK, Fp)  bf16  X @ W_r
      invdeg_ref: (1, TM, 1)                        f32   1/in-degree (0 if deg=0)
      root_ref:   (TM, Fp)                          f32   X @ W_root + bias
      o_ref:      (TM, Fp)                          f32   output accumulator
    """
    r = pl.program_id(1)
    k = pl.program_id(2)

    @pl.when((r == 0) & (k == 0))
    def _():
        o_ref[...] = root_ref[...]

    if xw_resident:
        start = pl.multiple_of(r * n_pad + k * tk, _LANE)
        xw = xw_ref[pl.ds(start, tk), :]
    else:
        xw = xw_ref[...]

    # int8 counts -> f32 -> bf16 on the VPU (exact: counts are small integers),
    # bf16 MXU matmul with f32 accumulation.
    a = a_ref[0].astype(jnp.float32).astype(jnp.bfloat16)
    msg = jnp.dot(a, xw, preferred_element_type=jnp.float32)
    # Mean aggregation: (counts @ XW) * (1/deg); equivalent to normalizing A.
    o_ref[...] += msg * invdeg_ref[0]

    if apply_relu:
        @pl.when((r == pl.num_programs(1) - 1) & (k == pl.num_programs(2) - 1))
        def _():
            o_ref[...] = jnp.maximum(o_ref[...], 0.0)


def rgcn_layer(a_counts, inv_deg, x, w_rel, w_root, bias, *, apply_relu, tm, tk):
    """a_counts: (R, N_pad, N_pad) int8, inv_deg: (R, N_pad, 1) f32,
    x: (N_pad, F_in) f32, w_rel: (R, F_in, F_out), w_root: (F_in, F_out),
    bias: (F_out,).  Returns (N_pad, F_out) f32."""
    R, n_pad, _ = a_counts.shape
    f_out = w_rel.shape[2]
    f_pad = _round_up(f_out, _LANE)

    # Lane-dense output width: zero-pad the output-feature axis.
    w_rel_p = jnp.pad(w_rel, ((0, 0), (0, 0), (0, f_pad - f_out)))
    w_root_p = jnp.pad(w_root, ((0, 0), (0, f_pad - f_out)))
    bias_p = jnp.pad(bias, (0, f_pad - f_out))

    # Hoisted, reassociated small matmuls (fused XLA matmuls in the wrapper):
    #   XW[r]  = X @ W_r          (bf16 storage; halves HBM/VMEM traffic)
    #   H_root = X @ W_root + b   (f32; removes 3 input streams from the kernel)
    xw = jnp.einsum("nf,rfo->rno", x, w_rel_p).astype(jnp.bfloat16)
    xw_flat = xw.reshape(R * n_pad, f_pad)
    h_root = (x @ w_root_p + bias_p[None, :]).astype(jnp.float32)

    num_i = n_pad // tm
    num_k = n_pad // tk

    xw_bytes = xw_flat.size * xw_flat.dtype.itemsize
    xw_resident = xw_bytes <= _XW_RESIDENT_BUDGET
    if xw_resident:
        # Whole XW lives in VMEM; constant block index -> DMA'd once, never again.
        xw_spec = pl.BlockSpec((R * n_pad, f_pad), lambda i, r, k: (0, 0))
    else:
        # Stream one (relation, k-tile) slab per reduction step.
        xw_spec = pl.BlockSpec((tk, f_pad), lambda i, r, k: (r * num_k + k, 0))

    kern = functools.partial(_rgcn_layer_kernel, apply_relu=apply_relu,
                             xw_resident=xw_resident, n_pad=n_pad, tk=tk)

    # Explicit VMEM budget (double-buffered streams + resident XW) with headroom.
    vmem_need = (
        2 * tm * tk                                              # A (int8)
        + (2 * xw_bytes if xw_resident else 2 * tk * f_pad * 2)  # XW (bf16)
        + 2 * tm * f_pad * 4                                     # root term
        + 2 * tm * f_pad * 4                                     # output acc
        + 2 * tm * 4                                             # inv_deg
    )
    vmem_limit = int(min(64 * 1024 * 1024,
                         max(16 * 1024 * 1024, 2 * vmem_need + (8 << 20))))

    cost = pl.CostEstimate(
        flops=int(2 * R * n_pad * n_pad * f_pad),
        transcendentals=0,
        bytes_accessed=int(
            a_counts.size                                        # int8 adjacency
            + (xw_bytes if xw_resident else num_i * xw_bytes)
            + h_root.size * 4 + inv_deg.size * 4
            + n_pad * f_pad * 4),
    )

    out = pl.pallas_call(
        kern,
        out_shape=jax.ShapeDtypeStruct((n_pad, f_pad), jnp.float32),
        grid_spec=pltpu.PrefetchScalarGridSpec(
            num_scalar_prefetch=0,
            grid=(num_i, R, num_k),                  # reduction axes (R, K) last
            in_specs=[
                pl.BlockSpec((1, tm, tk), lambda i, r, k: (r, i, k)),   # A counts
                xw_spec,                                                # X @ W_r
                pl.BlockSpec((1, tm, 1), lambda i, r, k: (r, i, 0)),    # 1/deg
                pl.BlockSpec((tm, f_pad), lambda i, r, k: (i, 0)),      # root+bias
            ],
            out_specs=pl.BlockSpec((tm, f_pad), lambda i, r, k: (i, 0)),
        ),
        compiler_params=pltpu.CompilerParams(
            dimension_semantics=("parallel", "arbitrary", "arbitrary"),
            vmem_limit_bytes=vmem_limit),
        cost_estimate=cost,
    )(a_counts, xw_flat, inv_deg, h_root)

    return out[:, :f_out]


def build_relation_adjacency(edge_index, edge_type, num_rels, n_pad):
    """Dense per-relation adjacency as int8 in-edge counts + f32 inverse degree.
    counts[r, i, j] = # edges j->i of type r;  inv_deg[r, i] = 1 / sum_j counts
    (0 for nodes with no in-edges of type r).  Padded rows/cols stay zero."""
    src, dst = edge_index[0], edge_index[1]
    counts = jnp.zeros((num_rels, n_pad, n_pad), jnp.float32)
    counts = counts.at[edge_type, dst, src].add(1.0)
    deg = counts.sum(axis=-1, keepdims=True)                    # (R, n_pad, 1)
    inv_deg = jnp.where(deg > 0.0, 1.0 / jnp.maximum(deg, 1.0), 0.0)
    # TODO(synk): >127 parallel same-type edges between one pair would overflow
    # int8; also the dense f32 intermediate here is the scalability limit.
    return counts.astype(jnp.int8), inv_deg.astype(jnp.float32)


def rgcn_forward(x, edge_index, edge_type, params, num_nodes, num_rels):
    """RGCN.forward: conv2(relu(conv1(x)))."""
    n_pad = _round_up(num_nodes, _LANE)
    tm, tk = _choose_tiles(n_pad)

    a_counts, inv_deg = build_relation_adjacency(edge_index, edge_type,
                                                 num_rels, n_pad)
    # NOTE: padded destination rows come out of layer 1 as relu(bias); harmless
    # because padded source columns of A are zero and padded rows are sliced off.
    x_pad = jnp.zeros((n_pad, x.shape[1]), jnp.float32).at[:num_nodes].set(x)

    h = rgcn_layer(a_counts, inv_deg, x_pad, params["w1_rel"], params["w1_root"],
                   params["b1"], apply_relu=True, tm=tm, tk=tk)
    out = rgcn_layer(a_counts, inv_deg, h, params["w2_rel"], params["w2_root"],
                     params["b2"], apply_relu=False, tm=tm, tk=tk)
    return out[:num_nodes]


def init_params(key, in_feat, hidden_feat, out_feat, num_rels):
    k1, k2, k3, k4 = jax.random.split(key, 4)

    def glorot(k, shape):
        fan_in, fan_out = shape[-2], shape[-1]
        lim = (6.0 / (fan_in + fan_out)) ** 0.5
        return jax.random.uniform(k, shape, jnp.float32, -lim, lim)

    return {
        "w1_rel": glorot(k1, (num_rels, in_feat, hidden_feat)),
        "w1_root": glorot(k2, (in_feat, hidden_feat)),
        "b1": jnp.zeros((hidden_feat,), jnp.float32),
        "w2_rel": glorot(k3, (num_rels, hidden_feat, out_feat)),
        "w2_root": glorot(k4, (hidden_feat, out_feat)),
        "b2": jnp.zeros((out_feat,), jnp.float32),
    }


def _rgcn_reference(x, edge_index, edge_type, params, num_nodes, num_rels):
    """Pure-JAX f32 reference (PyG RGCNConv 'mean' aggregation semantics)."""
    src, dst = edge_index[0], edge_index[1]

    def conv(h, w_rel, w_root, b):
        out = h @ w_root + b[None, :]
        for r in range(num_rels):
            sel = jnp.where(edge_type == r, 1.0, 0.0)
            a = jnp.zeros((num_nodes, num_nodes), jnp.float32)
            a = a.at[dst, src].add(sel)
            deg = a.sum(axis=-1, keepdims=True)
            a = a / jnp.maximum(deg, 1.0)
            out = out + a @ (h @ w_rel[r])
        return out

    h = jax.nn.relu(conv(x, params["w1_rel"], params["w1_root"], params["b1"]))
    return conv(h, params["w2_rel"], params["w2_root"], params["b2"])


if __name__ == "__main__":
    # Small synthetic graph consistent with the original script
    # (x = randn(num_nodes, 64); edges with relation types).
    num_nodes = 16
    num_edges = 40
    in_feat, hidden_feat, out_feat = 64, 32, 16
    num_rels = 3

    key = jax.random.PRNGKey(0)
    kx, ke, kt, kp = jax.random.split(key, 4)

    x = jax.random.normal(kx, (num_nodes, in_feat), dtype=jnp.float32)
    edge_index = jax.random.randint(ke, (2, num_edges), 0, num_nodes,
                                    dtype=jnp.int32)
    edge_type = jax.random.randint(kt, (num_edges,), 0, num_rels,
                                   dtype=jnp.int32)

    params = init_params(kp, in_feat, hidden_feat, out_feat, num_rels)

    out = rgcn_forward(x, edge_index, edge_type, params, num_nodes, num_rels)
    out = jax.block_until_ready(out)

    ref = _rgcn_reference(x, edge_index, edge_type, params, num_nodes, num_rels)
    ref = jax.block_until_ready(ref)

    assert out.shape == (num_nodes, out_feat)
    assert jnp.all(jnp.isfinite(out))
    # bf16 storage of X @ W_r gives ~1e-2 relative error vs the pure-f32 reference;
    # the adjacency path (int8 counts * f32 inv_deg) is exact.
    assert jnp.allclose(out, ref, rtol=5e-2, atol=1e-1), \
        float(jnp.max(jnp.abs(out - ref)))
    print("KERNEL_OK")
</pallas_src>

<mosaic_0001>
module attributes {stable_mosaic.version = 11 : i64} {
  func.func @_rgcn_layer_kernel(%arg0: i32, %arg1: i32, %arg2: i32, %arg3: memref<1x64x128xi8, #tpu.memory_space<vmem>>, %arg4: memref<384x128xbf16, #tpu.memory_space<vmem>>, %arg5: memref<1x64x1xf32, #tpu.memory_space<vmem>>, %arg6: memref<64x128xf32, #tpu.memory_space<vmem>>, %arg7: memref<64x128xf32, #tpu.memory_space<vmem>>) attributes {dimension_semantics = [#tpu.dimension_semantics<parallel>, #tpu.dimension_semantics<arbitrary>, #tpu.dimension_semantics<arbitrary>], iteration_bounds = array<i64: 2, 3, 1>, scalar_prefetch = 0 : i64, scratch_operands = 0 : i64, tpu.core_type = #tpu.core_type<tc>, window_params = [{transform_indices = @transform_0, window_bounds = array<i64: 1, 64, 128>}, {pipeline_mode = #tpu.pipeline_mode<synchronous>, transform_indices = @transform_1, window_bounds = array<i64: 384, 128>}, {transform_indices = @transform_2, window_bounds = array<i64: 1, 64, 1>}, {transform_indices = @transform_3, window_bounds = array<i64: 64, 128>}, {transform_indices = @transform_4, window_bounds = array<i64: 64, 128>}]} {
    %c0_i32 = arith.constant 0 : i32
    %0 = arith.cmpi eq, %arg1, %c0_i32 : i32
    %c0_i32_0 = arith.constant 0 : i32
    %1 = arith.cmpi eq, %arg2, %c0_i32_0 : i32
    %2 = arith.andi %0, %1 : i1
    %3 = arith.extui %2 : i1 to i32
    %c0_i32_1 = arith.constant 0 : i32
    %4 = arith.cmpi ne, %3, %c0_i32_1 : i32
    scf.if %4 {
      %c0_15 = arith.constant 0 : index
      %c0_16 = arith.constant 0 : index
      %28 = vector.load %arg6[%c0_15, %c0_16] : memref<64x128xf32, #tpu.memory_space<vmem>>, vector<64x128xf32>
      %c0_17 = arith.constant 0 : index
      %c0_18 = arith.constant 0 : index
      %29 = vector.load %arg7[%c0_17, %c0_18] : memref<64x128xf32, #tpu.memory_space<vmem>>, vector<64x128xf32>
      tpu.vector_store %arg7[%c0_17, %c0_18], %28 {strides = array<i32>} : memref<64x128xf32, #tpu.memory_space<vmem>>, vector<64x128xf32>,
    } else {
    }
    %c128_i32 = arith.constant 128 : i32
    %5 = arith.muli %arg1, %c128_i32 : i32
    %c128_i32_2 = arith.constant 128 : i32
    %6 = arith.muli %arg2, %c128_i32_2 : i32
    %7 = arith.addi %5, %6 : i32
    %8 = tpu.assume_multiple %7, 128 : i32
    %9 = arith.index_cast %8 : i32 to index
    %c0 = arith.constant 0 : index
    %10 = vector.load %arg4[%9, %c0] : memref<384x128xbf16, #tpu.memory_space<vmem>>, vector<128x128xbf16>
    %c0_3 = arith.constant 0 : index
    %c0_4 = arith.constant 0 : index
    %c0_5 = arith.constant 0 : index
    %11 = vector.load %arg3[%c0_3, %c0_4, %c0_5] : memref<1x64x128xi8, #tpu.memory_space<vmem>>, vector<1x64x128xi8>
    %12 = vector.shape_cast %11 : vector<1x64x128xi8> to vector<64x128xi8>
    %13 = arith.sitofp %12 : vector<64x128xi8> to vector<64x128xf32>
    %14 = arith.truncf %13 : vector<64x128xf32> to vector<64x128xbf16>
    %cst = arith.constant dense<0.000000e+00> : vector<64x128xf32>
    %15 = tpu.matmul %14, %10, %cst {dimension_numbers = #tpu.dot_dimension_numbers<[1], [0], [0], [1], [0, 0, 1, 1], [], []>} : vector<64x128xbf16>, vector<128x128xbf16>, vector<64x128xf32> -> vector<64x128xf32>
    %c0_6 = arith.constant 0 : index
    %c0_7 = arith.constant 0 : index
    %16 = vector.load %arg7[%c0_6, %c0_7] : memref<64x128xf32, #tpu.memory_space<vmem>>, vector<64x128xf32>
    %c0_8 = arith.constant 0 : index
    %c0_9 = arith.constant 0 : index
    %c0_10 = arith.constant 0 : index
    %17 = vector.load %arg5[%c0_8, %c0_9, %c0_10] : memref<1x64x1xf32, #tpu.memory_space<vmem>>, vector<1x64x1xf32>
    %18 = vector.shape_cast %17 : vector<1x64x1xf32> to vector<64x1xf32>
    %19 = vector.broadcast %18 : vector<64x1xf32> to vector<64x128xf32>
    %20 = arith.mulf %15, %19 : vector<64x128xf32>
    %21 = arith.addf %16, %20 : vector<64x128xf32>
    %c0_11 = arith.constant 0 : index
    %c0_12 = arith.constant 0 : index
    %22 = vector.load %arg7[%c0_11, %c0_12] : memref<64x128xf32, #tpu.memory_space<vmem>>, vector<64x128xf32>
    tpu.vector_store %arg7[%c0_11, %c0_12], %21 {strides = array<i32>} : memref<64x128xf32, #tpu.memory_space<vmem>>, vector<64x128xf32>,
    %c2_i32 = arith.constant 2 : i32
    %23 = arith.cmpi eq, %arg1, %c2_i32 : i32
    %c0_i32_13 = arith.constant 0 : i32
    %24 = arith.cmpi eq, %arg2, %c0_i32_13 : i32
    %25 = arith.andi %23, %24 : i1
    %26 = arith.extui %25 : i1 to i32
    %c0_i32_14 = arith.constant 0 : i32
    %27 = arith.cmpi ne, %26, %c0_i32_14 : i32
    scf.if %27 {
      %c0_15 = arith.constant 0 : index
      %c0_16 = arith.constant 0 : index
      %28 = vector.load %arg7[%c0_15, %c0_16] : memref<64x128xf32, #tpu.memory_space<vmem>>, vector<64x128xf32>
      %cst_17 = arith.constant 0.000000e+00 : f32
      %29 = vector.broadcast %cst_17 : f32 to vector<64x128xf32>
      %30 = arith.maximumf %28, %29 : vector<64x128xf32>
      %c0_18 = arith.constant 0 : index
      %c0_19 = arith.constant 0 : index
      %31 = vector.load %arg7[%c0_18, %c0_19] : memref<64x128xf32, #tpu.memory_space<vmem>>, vector<64x128xf32>
      tpu.vector_store %arg7[%c0_18, %c0_19], %30 {strides = array<i32>} : memref<64x128xf32, #tpu.memory_space<vmem>>, vector<64x128xf32>,
    } else {
    }
    return
  }
  func.func @transform_0(%arg0: i32, %arg1: i32, %arg2: i32) -> (i32, i32, i32) {
    %c0_i32 = arith.constant 0 : i32
    return %arg1, %arg0, %arg2 : i32, i32, i32
  }
  func.func @transform_1(%arg0: i32, %arg1: i32, %arg2: i32) -> (i32, i32) {
    %c0_i32 = arith.constant 0 : i32
    %c0_i32_0 = arith.constant 0 : i32
    %c0_i32_1 = arith.constant 0 : i32
    return %c0_i32, %c0_i32_0 : i32, i32
  }
  func.func @transform_2(%arg0: i32, %arg1: i32, %arg2: i32) -> (i32, i32, i32) {
    %c0_i32 = arith.constant 0 : i32
    %c0_i32_0 = arith.constant 0 : i32
    return %arg1, %arg0, %c0_i32 : i32, i32, i32
  }
  func.func @transform_3(%arg0: i32, %arg1: i32, %arg2: i32) -> (i32, i32) {
    %c0_i32 = arith.constant 0 : i32
    %c0_i32_0 = arith.constant 0 : i32
    return %arg0, %c0_i32 : i32, i32
  }
  func.func @transform_4(%arg0: i32, %arg1: i32, %arg2: i32) -> (i32, i32) {
    %c0_i32 = arith.constant 0 : i32
    %c0_i32_0 = arith.constant 0 : i32
    return %arg0, %c0_i32 : i32, i32
  }
}

</mosaic_0001>

<bundles_post_ra>
// kernel: tpu_custom_call.1
= control target key start
LH: loop header
LB: loop body
LE: loop exit
PB: predicated region body
PF: predicated region fallthrough
CT: control target
= control target key end

     0   :  { %9 = vsyncpa [#allocation3], 0  ;;  %s1339_s0 = inlined_call_operand.hbm [shape: s8[3,128,128], index: 0, kind: input, shape index: {}]   ;;  %s1340_s1 = inlined_call_operand.vmem [shape: bf16[384,128], index: 1, kind: input, shape index: {}]   ;;  %s1341_s2 = inlined_call_operand.vmem [shape: f32[3,128,1], index: 2, kind: input, shape index: {}]   ;;  %s1342_s3 = inlined_call_operand.vmem [shape: f32[128,128], index: 3, kind: input, shape index: {}]   ;;  %s1343_s4 = inlined_call_operand.hbm [shape: f32[128,128], index: 4, kind: output, shape index: {}]  }
   0x1   :  { %11 = vsyncpa [#allocation3 + $0x1], 0 }
   0x2   :  { %12 = vsyncpa [#allocation4], 0 }
   0x3   :  { %14 = vsyncpa [#allocation4 + $0x1], 0  ;;  %s1082_s15 = smov 0   ;;  %s1084_s16 = smov 0  }
   0x4   :  { %s1086_s17 = smov 0   ;;  %s1088_s18 = smov 0  }
   0x5   :  { %s1090_s19 = smov 0   ;;  %s1092_s20 = smov 0  }
   0x6   :  { %s1094_s21 = smov 0   ;;  %s1096_s22 = smov 0  }
   0x7   :  { %s1098_s23 = smov 0   ;;  %s1100_s24 = smov 0  }
   0x8   :  { %s1102_s25 = smov 0  }
   0x9 LB: > { %1349 = sst [smem:[#allocation8_spill]] %s1018_s17  ;;  %s696_s26 = sadd.s32 4294967295, %s1050_s25   ;;  %s1050_s25 = sphi %s1102_s25, %s20_s25   ;;  %s1046_s24 = sphi %s1100_s24, %s1374_s24   ;;  %s1042_s23 = sphi %s1098_s23, %s1373_s23   ;;  %s1038_s22 = sphi %s1096_s22, %s1372_s22   ;;  %s1034_s21 = sphi %s1094_s21, %s1371_s21   ;;  %s1030_s20 = sphi %s1092_s20, %s1364_s20   ;;  %s1026_s19 = sphi %s1090_s19, %s1370_s19   ;;  %s1022_s18 = sphi %s1088_s18, %s1369_s18   ;;  %s1018_s17 = sphi %s1086_s17, %s1362_s17   ;;  %s1014_s16 = sphi %s1084_s16, %s1368_s16   ;;  %s1010_s15 = sphi %s1082_s15, %s1367_s15  }
   0xa   : > { %1350 = sst [smem:[#allocation9_spill]] %s1030_s20  ;;  %s697_s27 = sadd.s32 4294967294, %s1050_s25  }
   0xb   : > { %s35_s28 = sadd.s32 1, %s1042_s23  ;;  %s39_s29 = sadd.s32 1, %s1046_s24 }
   0xc   : > { %p37_p0 = scmp.ge.s32.totalorder %s35_s28, 3  ;;  %s50_s30 = sadd.s32 1, %s1030_s20 }
   0xd   : > { %p57_p1 = scmp.ne.s32.totalorder %s1030_s20, %s1026_s19  ;;  %p58_p2 = scmp.eq.s32.totalorder %s1050_s25, 0 }
   0xe   : > { %s1376_s28 = smov (%p37_p0, %s35_s28), 0  ;;  %s1378_s29 = smov (!%p37_p0, %s39_s29), %s1046_s24 }
   0xf   : > { %1351 = sst [smem:[#allocation10_spill]] %s1376_s28  ;;  %s43_s5 = ssub.s32 %s1042_s23, %s1376_s28 }
  0x10   : > { %p1148_p3 = por %p58_p2, %p57_p1  ;;  %p41_p4 = scmp.ge.s32.totalorder %s1378_s29, 2 }
  0x11   : > { %p63_p5 = scmp.ne.s32.totalorder %s1026_s19, %s1022_s18  ;;  %p64_p6 = scmp.eq.s32.totalorder %s696_s26, 0 }
  0x12   : > { %s151_s7 = sadd.s32 1, %s1018_s17  ;;  %s1380_s29 = smov (%p41_p4, %s1378_s29), 0 }
  0x13   : > { %1353 = sst [smem:[#allocation11_spill]] %s1380_s29  ;;  %p1156_p7 = por %p64_p6, %p63_p5 }
  0x14   : > { %p161_p8 = scmp.ne.s32.totalorder %s1018_s17, %s1014_s16  ;;  %s44_s9 = ssub.s32 %s1046_s24, %s1380_s29 }
  0x15   : > { %p162_p9 = scmp.eq.s32.totalorder %s696_s26, 5  ;;  %s45_s10 = sor.u32 %s44_s9, %s43_s5 }
  0x16   : > { %p149_p10 = scmp.eq.s32.totalorder %s44_s9, 0  ;;  %p48_p11 = scmp.eq.s32.totalorder %s45_s10, 0 }
  0x17   : > { %p1164_p12 = por %p162_p9, %p161_p8  ;;  %p167_p13 = scmp.ne.s32.totalorder %s1014_s16, %s1010_s15 }
  0x18   : > { %s1169_s12 = scalar_select %p149_p10, %s1018_s17, %s151_s7  }
  0x19   : > { %s1172_s13 = scalar_select %p48_p11, %s1030_s20, %s50_s30  }
  0x1a   : > { %1356 = sst [smem:[#allocation12_spill]] %s1169_s12  ;;  %p168_p0 = scmp.eq.s32.totalorder %s697_s27, 5 }
  0x1b   : > { %1357 = sst [smem:[#allocation13_spill]] %s1172_s13  ;;  %p800_p1 = scmp.lt.s32.totalorder %s1050_s25, 6 }
  0x1c   : > { %p1177_p2 = por %p168_p0, %p167_p13  ;;  %s191_s18 = sand.u32 1, %s1030_s20  }
  0x1d   : > { %s700_s26 = sshll.u32 %s191_s18, 4  ;;  %s701_s5 = sshll.u32 %s1046_s24, 1 }
  0x1e   : > { %s1358_s14 = scalar_select %p1177_p2, 1, 0 }
  0x1f   : > { %s702_s9 = sshll.u32 %s1042_s23, 2  ;;  %s195_s10 = scalar_lea.vmem [#allocation2], %s700_s26 }
  0x20   : > { %1359 = sst [smem:[#allocation14_spill]] %s1358_s14  ;;  %s206_s29 = sshll.u32 %s195_s10, 4  ;;  %s207_s29 = int_to_ptr.vmem [resolvable:$true] %s206_s29 }
  0x21   : > { %s201_s28 = sadd.s32 %s702_s9, %s701_s5  ;;  %p793_p4 = pnand %p800_p1, %p1148_p3 }
  0x22   : > { %s703_s7 = sshll.u32 %s201_s28, 3  ;;  %s192_s17 = scalar_lea.sflag [#allocation3], %s191_s18 }
  0x23   : > { %s203_s13 = scalar_lea.hbm %s1339_s0, %s703_s7  ;;  %s1052_s20 = smov 128  }
  0x24   : > { %s204_s12 = sshll.u32 %s203_s13, 4  ;;  %s1053_s14 = smov 8   ;;  %s205_s12 = int_to_ptr.hbm [resolvable:$true] %s204_s12 }
  0x25   : > { %795 = dma.hbm_to_vmem [thread:$0]  (!%p793_p4), %s205_s12, 256, %s207_s29, %s192_s17, %s1052_s20, %s1052_s20, %s1053_s14  }
  0x26   : > { %p704_p5 = scmp.ge.s32.totalorder %s1050_s25, 1  ;;  %p236_p6 = scmp.lt.s32.totalorder %s1050_s25, 7 }
  0x28   : > { %p237_p8 = pnand %p704_p5, %p236_p6 }
  0x29   : > { %s242_s26 = sand.u32 (!%p237_p8), 1, %s1026_s19  }
  0x2a   : > { %240 = sbr.rel (%p237_p8) target bundleno = 273 (0x111), region = 36  ;;  %s1192_s28 = sshll.u32 (!%p237_p8), %s242_s26, 4 }
  0x2b   : > { %s243_s6 = scalar_lea.sflag (!%p237_p8), [#allocation3], %s242_s26  ;;  %s246_s5 = scalar_lea.vmem (!%p237_p8), [#allocation2], %s1192_s28 }
  0x2f   : > { %1001 = dma.done.wait (%p1156_p7), %s243_s6, 256  }
  0x30   : > { %1003 = vsyncadd (%p1156_p7), %s243_s6, 4294967040  ;;  %s283_s17 = sand.u32 1, %s1014_s16   ;;  %s707_s20 = sshll.u32 %s1038_s22, 3 }
  0x31   : > { %s706_s29 = sshll.u32 %s283_s17, 6  ;;  %p288_p3 = scmp.lt.s32.totalorder %s1034_s21, 2 }
  0x32   : > { %p290_p9 = scmp.lt.s32.totalorder %s707_s20, 15  ;;  %p304_p10 = scmp.eq.s32.totalorder %s1034_s21, 0 }
  0x33   : > { %s289_s12 = scalar_select %p288_p3, %s1034_s21, 2 }
  0x34   : > { %s1382_s20 = smov (!%p290_p9, %s707_s20), 15  ;;  %s1214_s6 = scalar_lea.vmem [#allocation5], %s706_s29 }
  0x35   : > { %s708_s13 = sshll.u32 %s289_s12, 4  ;;  %s711_s18 = sshll.u32 %s1382_s20, 3 }
  0x36   : > { %s293_s14 = sadd.s32 %s708_s13, %s1382_s20  ;;  %s301_s7 = scalar_lea.vmem %s1342_s3, %s711_s18 }
  0x37   : > { %s709_s8 = sshll.u32 %s293_s14, 3  ;;  %309 = sbr.rel (!%p304_p10) target bundleno = 64 (0x40), region = 44  ;;  %v310_v0 = vld [vmem:[%s301_s7] sm:$0xff] (%p304_p10)  ;;  %v311_v1 = vld [vmem:[%s301_s7 + $0x8] sm:$0xff] (%p304_p10)  ;;  %v312_v2 = vld [vmem:[%s301_s7 + $0x10] sm:$0xff] (%p304_p10) }
  0x38   : > { %s1212_s26 = scalar_lea.vmem %s1341_s2, %s709_s8  ;;  %318 = vst [vmem:[%s1214_s6] sm:$0xff] (%p304_p10), %v310_v0  ;;  %v313_v3 = vld [vmem:[%s301_s7 + $0x18] sm:$0xff] (%p304_p10)  ;;  %v314_v4 = vld [vmem:[%s301_s7 + $0x20] sm:$0xff] (%p304_p10)  ;;  %v315_v5 = vld [vmem:[%s301_s7 + $0x28] sm:$0xff] (%p304_p10) }
  0x39   : > { %319 = vst [vmem:[%s1214_s6 + $0x8] sm:$0xff] (%p304_p10), %v311_v1  ;;  %v316_v6 = vld [vmem:[%s301_s7 + $0x30] sm:$0xff] (%p304_p10)  ;;  %v317_v7 = vld [vmem:[%s301_s7 + $0x38] sm:$0xff] (%p304_p10) }
  0x3a   : > { %320 = vst [vmem:[%s1214_s6 + $0x10] sm:$0xff] (%p304_p10), %v312_v2 }
  0x3b   : > { %321 = vst [vmem:[%s1214_s6 + $0x18] sm:$0xff] (%p304_p10), %v313_v3 }
  0x3c   : > { %322 = vst [vmem:[%s1214_s6 + $0x20] sm:$0xff] %v314_v4 }
  0x3d   : > { %323 = vst [vmem:[%s1214_s6 + $0x28] sm:$0xff] %v315_v5 }
  0x3e   : > { %324 = vst [vmem:[%s1214_s6 + $0x30] sm:$0xff] %v316_v6 }
  0x3f   : > { %325 = vst [vmem:[%s1214_s6 + $0x38] sm:$0xff] %v317_v7 }
  0x40 PF: > { %s713_s20 = sshll.u32 %s1034_s21, 7  ;;  %v458_v8 = vld [vmem:[%s1212_s26 + $0x10] sm:$0xff]  ;;  %v456_v9 = vld [vmem:[%s1212_s26] sm:$0xff]  ;;  %v1054_v10 = vmov 0   ;;  %v459_v14 = vld [vmem:[%s1212_s26 + $0x18] sm:$0xff]  ;;  %p528_p7 = scmp.eq.s32.totalorder %s1034_s21, 2 }
  0x41   : > { %s329_s29 = sshra.s32 %s713_s20, 3  ;;  %896 = vset.pattern.permute.xlu1 %v1054_v10  ;;  %895 = vset.pattern.permute.xlu0 %v1054_v10  ;;  %v460_v13 = vld [vmem:[%s1212_s26 + $0x20] sm:$0xff]  ;;  %v457_v15 = vld [vmem:[%s1212_s26 + $0x8] sm:$0xff]  ;;  %v463_v19 = vld [vmem:[%s1212_s26 + $0x38] sm:$0xff] }
  0x42   : > { %s714_s12 = sshll.u32 %s329_s29, 2  ;;  %476 = vperm.xlu1 %896, %v458_v8   ;;  %466 = vperm.xlu0 %895, %v456_v9   ;;  %v461_v18 = vld [vmem:[%s1212_s26 + $0x28] sm:$0xff]  ;;  %v462_v20 = vld [vmem:[%s1212_s26 + $0x30] sm:$0xff] }
  0x43   : > { %s1230_s18 = scalar_lea.vmem %s1340_s1, %s714_s12  ;;  %897 = vset.pattern.permute.xlu2 %v1054_v10  ;;  %v349_v23 = vld [vmem:[%s246_s5] sm:$0xff]  ;;  %v350_v24 = vld [vmem:[%s246_s5 + $0x8] sm:$0xff] }
  0x44   : > { %v761_v11 = vld [vmem:[%s1230_s18 + $0x38] sm:$0xff]  ;;  %v760_v12 = vld [vmem:[%s1230_s18 + $0x30] sm:$0xff]  ;;  %486 = vperm.xlu2 %897, %v460_v13   ;;  %v759_v16 = vld [vmem:[%s1230_s18 + $0x28] sm:$0xff]  ;;  %v351_v25 = vunpack.c.0.s8 %v349_v23  ;;  %v352_v26 = vunpack.c.1.s8 %v349_v23  ;;  %v353_v27 = vunpack.c.2.s8 %v349_v23  ;;  %v354_v28 = vunpack.c.3.s8 %v349_v23 }
  0x45   : > { %419 = vmatpush.bf16.msra.mxu0 %v761_v11  ;;  %764 = vmatpush.bf16.msra.mxu1 %v761_v11  ;;  %v758_v17 = vld [vmem:[%s1230_s18 + $0x20] sm:$0xff]  ;;  %v757_v21 = vld [vmem:[%s1230_s18 + $0x18] sm:$0xff]  ;;  %v756_v22 = vld [vmem:[%s1230_s18 + $0x10] sm:$0xff]  ;;  %v355_v30 = vunpack.c.0.s8 %v350_v24  ;;  %v356_v31 = vunpack.c.1.s8 %v350_v24  ;;  %v357_v32 = vunpack.c.2.s8 %v350_v24  ;;  %v358_v33 = vunpack.c.3.s8 %v350_v24 }
  0x46   : > { %765 = vmatpush.bf16.msra.mxu2 %v761_v11  ;;  %766 = vmatpush.bf16.msra.mxu3 %v761_v11  ;;  %v755_v29 = vld [vmem:[%s1230_s18 + $0x8] sm:$0xff]  ;;  %v359_v34 = vcvt.s32.f32 %v351_v25  ;;  %v360_v35 = vcvt.s32.f32 %v352_v26  ;;  %v361_v36 = vcvt.s32.f32 %v353_v27  ;;  %v362_v37 = vcvt.s32.f32 %v354_v28  ;;  %v754_v38 = vld [vmem:[%s1230_s18] sm:$0xff]  ;;  %v450_v53 = vld [vmem:[%s1214_s6 + $0x10] sm:$0xff] }
  0x47   : > { %v363_v39 = vcvt.s32.f32 %v355_v30  ;;  %v364_v40 = vcvt.s32.f32 %v356_v31  ;;  %v365_v41 = vcvt.s32.f32 %v357_v32  ;;  %v366_v42 = vcvt.s32.f32 %v358_v33  ;;  %v448_v51 = vld [vmem:[%s1214_s6] sm:$0xff]  ;;  %v454_v0 = vld [vmem:[%s1214_s6 + $0x30] sm:$0xff]  ;;  %v449_v4 = vld [vmem:[%s1214_s6 + $0x8] sm:$0xff] }
  0x48   : > { %v367_v43 = vpack.c.bf16 %v360_v35, %v359_v34  ;;  %v368_v44 = vpack.c.bf16 %v362_v37, %v361_v36  ;;  %v452_v62 = vld [vmem:[%s1214_s6 + $0x20] sm:$0xff]  ;;  %v451_v6 = vld [vmem:[%s1214_s6 + $0x18] sm:$0xff] }
  0x49   : > { %420 = vmatpush.bf16.msra.mxu0 %v760_v12  ;;  %767 = vmatpush.bf16.msra.mxu1 %v760_v12  ;;  %v369_v45 = vpack.c.bf16 %v364_v40, %v363_v39  ;;  %v370_v46 = vpack.c.bf16 %v366_v42, %v365_v41 }
  0x4a   : > { %768 = vmatpush.bf16.msra.mxu2 %v760_v12  ;;  %769 = vmatpush.bf16.msra.mxu3 %v760_v12 }
  0x4b   : > { %481 = vperm.xlu1 %896, %v459_v14   ;;  %471 = vperm.xlu0 %895, %v457_v15  }
  0x4c   : > { %491 = vperm.xlu2 %897, %v461_v18   ;;  %v455_v18 = vld [vmem:[%s1214_s6 + $0x38] sm:$0xff] }
  0x4d   : > { %421 = vmatpush.bf16.msra.mxu0 %v759_v16  ;;  %770 = vmatpush.bf16.msra.mxu1 %v759_v16 }
  0x4e   : > { %771 = vmatpush.bf16.msra.mxu2 %v759_v16  ;;  %772 = vmatpush.bf16.msra.mxu3 %v759_v16  ;;  %v453_v16 = vld [vmem:[%s1214_s6 + $0x28] sm:$0xff] }
  0x51   : > { %422 = vmatpush.bf16.msra.mxu0 %v758_v17  ;;  %773 = vmatpush.bf16.msra.mxu1 %v758_v17 }
  0x52   : > { %774 = vmatpush.bf16.msra.mxu2 %v758_v17  ;;  %775 = vmatpush.bf16.msra.mxu3 %v758_v17 }
  0x53   : > { %501 = vperm.xlu1 %896, %v463_v19   ;;  %496 = vperm.xlu0 %895, %v462_v20  }
  0x55   : > { %423 = vmatpush.bf16.msra.mxu0 %v757_v21  ;;  %776 = vmatpush.bf16.msra.mxu1 %v757_v21 }
  0x56   : > { %777 = vmatpush.bf16.msra.mxu2 %v757_v21  ;;  %778 = vmatpush.bf16.msra.mxu3 %v757_v21 }
  0x59   : > { %424 = vmatpush.bf16.msra.mxu0 %v756_v22  ;;  %779 = vmatpush.bf16.msra.mxu1 %v756_v22 }
  0x5a   : > { %780 = vmatpush.bf16.msra.mxu2 %v756_v22  ;;  %781 = vmatpush.bf16.msra.mxu3 %v756_v22 }
  0x5d   : > { %425 = vmatpush.bf16.msra.mxu0 %v755_v29  ;;  %782 = vmatpush.bf16.msra.mxu1 %v755_v29 }
  0x5e   : > { %783 = vmatpush.bf16.msra.mxu2 %v755_v29  ;;  %784 = vmatpush.bf16.msra.mxu3 %v755_v29 }
  0x61   : > { %426 = vmatpush.bf16.msra.mxu0 %v754_v38  ;;  %785 = vmatpush.bf16.msra.mxu1 %v754_v38 }
  0x62   : > { %786 = vmatpush.bf16.msra.mxu2 %v754_v38  ;;  %787 = vmatpush.bf16.msra.mxu3 %v754_v38 }
  0x64   : > { %427 = vmatmul.bf16.vlgmr.msra.gmra.mxu0 %v367_v43  ;;  %432 = vmatmul.bf16.vlgmr.msra.gmra.mxu1 %v368_v44 }
  0x65   : > { %437 = vmatmul.bf16.vlgmr.msra.gmra.mxu2 %v369_v45  ;;  %442 = vmatmul.bf16.vlgmr.msra.gmra.mxu3 %v370_v46 }
  0x9e   : > { %v487_v59 = vpop.permute.xlu2 %486 }
  0xa6   : > { %v492_v14 = vpop.permute.xlu2 %491 }
  0xb4   : > { %v467_v47 = vpop.permute.xlu0 %466  ;;  %v477_v48 = vpop.permute.xlu1 %476 }
  0xbd   : > { %v472_v49 = vpop.permute.xlu0 %471  ;;  %v482_v58 = vpop.permute.xlu1 %481 }
  0xc5   : > { %v497_v60 = vpop.permute.xlu0 %496  ;;  %v502_v13 = vpop.permute.xlu1 %501 }
  0xe1   : > { %v428_v50 = vpop.f32.mrf.mxu0  ;;  %v433_v52 = vpop.f32.mrf.mxu1 }
  0xe2   : > { %v504_v54 = vmul.f32 %v467_v47, %v428_v50  ;;  %v506_v55 = vmul.f32 %v477_v48, %v433_v52 }
  0xe4   : > { %v512_v56 = vadd.f32 %v504_v54, %v448_v51  ;;  %v514_v57 = vadd.f32 %v506_v55, %v450_v53 }
  0xe6   : > { %520 = vst [vmem:[%s1214_s6] sm:$0xff] %v512_v56 }
  0xe7   : > { %522 = vst [vmem:[%s1214_s6 + $0x10] sm:$0xff] %v514_v57 }
  0xe8   : > { %v438_v61 = vpop.f32.mrf.mxu2  ;;  %v443_v63 = vpop.f32.mrf.mxu3 }
  0xe9   : > { %v508_v1 = vmul.f32 %v487_v59, %v438_v61  ;;  %v510_v2 = vmul.f32 %v497_v60, %v443_v63  ;;  %v430_v3 = vpop.f32.mrf.mxu0  ;;  %v435_v5 = vpop.f32.mrf.mxu1 }
  0xea   : > { %v505_v7 = vmul.f32 %v472_v49, %v430_v3  ;;  %v507_v8 = vmul.f32 %v482_v58, %v435_v5 }
  0xeb   : > { %v516_v9 = vadd.f32 %v508_v1, %v452_v62  ;;  %v518_v10 = vadd.f32 %v510_v2, %v454_v0 }
  0xec   : > { %v513_v11 = vadd.f32 %v505_v7, %v449_v4  ;;  %v515_v12 = vadd.f32 %v507_v8, %v451_v6 }
  0xed   : > { %524 = vst [vmem:[%s1214_s6 + $0x20] sm:$0xff] %v516_v9  ;;  %v533_v23 = vld [vmem:[%s1214_s6] sm:$0xff] (%p528_p7) }
  0xee   : > { %526 = vst [vmem:[%s1214_s6 + $0x30] sm:$0xff] %v518_v10  ;;  %v535_v25 = vld [vmem:[%s1214_s6 + $0x10] sm:$0xff] (%p528_p7)  ;;  %v541_v26 = vmax.f32 (%p528_p7), %v533_v23, 0.0 }
  0xef   : > { %521 = vst [vmem:[%s1214_s6 + $0x8] sm:$0xff] %v513_v11  ;;  %v543_v28 = vmax.f32 (%p528_p7), %v535_v25, 0.0 }
  0xf0   : > { %523 = vst [vmem:[%s1214_s6 + $0x18] sm:$0xff] %v515_v12  ;;  %v440_v15 = vpop.f32.mrf.mxu2  ;;  %v445_v17 = vpop.f32.mrf.mxu3 }
  0xf1   : > { %v509_v19 = vmul.f32 %v492_v14, %v440_v15  ;;  %v511_v20 = vmul.f32 %v502_v13, %v445_v17  ;;  %549 = vst [vmem:[%s1214_s6] sm:$0xff] (%p528_p7), %v541_v26 }
  0xf2   : > { %532 = sbr.rel (!%p528_p7) target bundleno = 257 (0x101), region = 48  ;;  %551 = vst [vmem:[%s1214_s6 + $0x10] sm:$0xff] (%p528_p7), %v543_v28 }
  0xf3   : > { %v517_v21 = vadd.f32 %v509_v19, %v453_v16  ;;  %v519_v22 = vadd.f32 %v511_v20, %v455_v18 }
  0xf4   : > { %v537_v30 = vld [vmem:[%s1214_s6 + $0x20] sm:$0xff] (%p528_p7) }
  0xf5   : > { %525 = vst [vmem:[%s1214_s6 + $0x28] sm:$0xff] %v517_v21  ;;  %v539_v33 = vld [vmem:[%s1214_s6 + $0x30] sm:$0xff] (%p528_p7)  ;;  %v545_v34 = vmax.f32 (%p528_p7), %v537_v30, 0.0 }
  0xf6   : > { %527 = vst [vmem:[%s1214_s6 + $0x38] sm:$0xff] %v519_v22  ;;  %v534_v24 = vld [vmem:[%s1214_s6 + $0x8] sm:$0xff] (%p528_p7)  ;;  %v547_v37 = vmax.f32 (%p528_p7), %v539_v33, 0.0 }
  0xf7   : > { %v542_v27 = vmax.f32 %v534_v24, 0.0  ;;  %v536_v29 = vld [vmem:[%s1214_s6 + $0x18] sm:$0xff]  ;;  %553 = vst [vmem:[%s1214_s6 + $0x20] sm:$0xff] %v545_v34 }
  0xf8   : > { %v544_v32 = vmax.f32 %v536_v29, 0.0  ;;  %555 = vst [vmem:[%s1214_s6 + $0x30] sm:$0xff] %v547_v37 }
  0xf9   : > { %550 = vst [vmem:[%s1214_s6 + $0x8] sm:$0xff] %v542_v27 }
  0xfa   : > { %552 = vst [vmem:[%s1214_s6 + $0x18] sm:$0xff] %v544_v32 }
  0xfc   : > { %v538_v31 = vld [vmem:[%s1214_s6 + $0x28] sm:$0xff] }
  0xfd   : > { %v540_v35 = vld [vmem:[%s1214_s6 + $0x38] sm:$0xff]  ;;  %v546_v36 = vmax.f32 %v538_v31, 0.0 }
  0xfe   : > { %v548_v38 = vmax.f32 %v540_v35, 0.0 }
  0xff   : > { %554 = vst [vmem:[%s1214_s6 + $0x28] sm:$0xff] %v546_v36 }
 0x100   : > { %556 = vst [vmem:[%s1214_s6 + $0x38] sm:$0xff] %v548_v38 }
 0x101 PF: > { %s763_s21 = sshll.u32 %s1038_s22, 6  ;;  %s570_s9 = sshll.u32 %s1214_s6, 4  ;;  %s571_s9 = int_to_ptr.vmem [resolvable:$true] %s570_s9 }
 0x102   : > { %s569_s8 = scalar_lea.hbm %s1343_s4, %s763_s21  ;;  %s558_s7 = scalar_lea.sflag [#allocation4], %s283_s17 }
 0x103   : > { %s572_s10 = sshll.u32 %s569_s8, 4  ;;  %s948_s22 = scalar_lea.hbm %s1343_s4, 128  ;;  %s573_s10 = int_to_ptr.hbm [resolvable:$true] %s572_s10 }
 0x104   : > { %s942_s30 = sshra.s32 %s573_s10, 4  ;;  %s943_s30 = int_to_ptr.hbm [resolvable:$true] %s942_s30 }
 0x105   : > { %s944_s27 = scalar_lea.hbm %s943_s30, 64  ;;  %p949_p1 = scmp.lt.s32.totalorder %s943_s30, %s1343_s4 }
 0x106   : > { %p945_p11 = scmp.ne.s32.totalorder %s943_s30, %s944_s27  ;;  %p950_p4 = scmp.lt.s32.totalorder %s948_s22, %s944_s27 }
 0x108   : > { %p946_p13 = pnand %p945_p11, %p1164_p12  ;;  %p951_p5 = por %p950_p4, %p949_p1 }
 0x10a   : > { %p947_p0 = pneg %p946_p13 }
 0x10c   : > { %p952_p6 = pnand %p951_p5, %p947_p0 }
 0x10e   : > { %955 = shalt.err (!%p952_p6)
}
 0x10f   : > { %s1055_s17 = smov 128   ;;  %s1056_s6 = smov 8  }
 0x110   : > { %790 = dma.vmem_to_hbm [thread:$0]  (%p1164_p12), %s571_s9, 1024, %s573_s10, %s558_s7, %s1055_s17, %s1055_s17, %s1056_s6  }
 0x111 PF: > { %p801_p8 = scmp.ge.s32.totalorder %s1050_s25, 2  ;;  %s587_s14 = sand.u32 1, %s1010_s15  }
 0x112   : > { %s588_s18 = scalar_lea.sflag [#allocation4], %s587_s14 }
 0x113   : > { %p797_p3 = pnand %p801_p8, %p1177_p2 }
 0x115   : > { %p798_p9 = pneg %p797_p3 }
 0x117   : > { %1005 = dma.done.wait (%p798_p9), %s588_s18, 1024  }
 0x118   : > { %1007 = vsyncadd (%p798_p9), %s588_s18, 4294966272  ;;  %s20_s25 = sadd.s32 1, %s1050_s25   ;;  %s1361_s21 = sld [smem:[#allocation8_spill]] }
 0x119   : > { %p17_p10 = scmp.ge.s32.totalorder %s20_s25, 8   ;;  %s1362_s17 = sld [smem:[#allocation12_spill]] }
 0x11a   : > { %s1363_s11 = sld [smem:[#allocation9_spill]]  ;;  %s1367_s15 = smov %s1014_s16 }
 0x11b   : > { %s1364_s20 = sld [smem:[#allocation13_spill]]  ;;  %s1369_s18 = smov %s1026_s19 }
 0x11c   : > { %s1365_s28 = sld [smem:[#allocation10_spill]]  ;;  %s1372_s22 = smov %s1046_s24 }
 0x11d   : > { %s1366_s5 = sld [smem:[#allocation11_spill]] }
 0x11e   : > { %s1368_s16 = smov %s1361_s21  ;;  %s1371_s21 = smov %s1042_s23 }
 0x11f   :  { %19 = sbr.rel (!%p17_p10) target bundleno = 9 (0x9), region = 96 }
 0x120   : > { %s1370_s19 = smov %s1363_s11 }
 0x122   : > { %s1373_s23 = smov %s1365_s28 }
 0x123   : > { %s1374_s24 = smov %s1366_s5 }
 0x124   :  { %594 = vsyncpa [#allocation3], 1 }
 0x125   :  { %596 = vsyncpa [#allocation3 + $0x1], 1 }
 0x126   :  { %597 = vsyncpa [#allocation4], 1 }
 0x127   :  { %599 = vsyncpa [#allocation4 + $0x1], 1 }

</bundles_post_ra>
